<compile_context>
chip_gen: v7x
topology: tpu7x:2x2x1
jax: 0.10.0
libtpu: 0.0.40
codegen_flags: <defaults>
</compile_context>

<pallas_src>
import jax
import jax.numpy as jnp
from jax.experimental import pallas as pl
from jax.experimental.pallas import tpu as pltpu

# Model hyper-parameters (match PNN.__init__ defaults at small sizes).
FIELD_SIZE = 4
EMB_SIZE = 4
FE = FIELD_SIZE * EMB_SIZE                 # 16
FFE = FIELD_SIZE * FIELD_SIZE * EMB_SIZE   # 64
D1 = 10
H1 = 12
H2 = 4
BN_EPS = 1e-5
FEATURE_SIZES = [5, 5, 5, 5]               # sum = 20 embedding rows
TILE_N_MAX = 8192                          # lanes per grid step (multiple of 128)

WBIG_COLS = FE + FFE + 1 + H2              # [wz | wc | b1 | w2.T] = 85


# ---------------------------------------------------------------------------
# Kernel
# ---------------------------------------------------------------------------
def _pnn_kernel(x_ref, wbig_ref, wsmall_ref, o_ref):
    """One batch tile in transposed layout.  x_ref: (16, T) bfloat16."""
    x = x_ref[...].astype(jnp.float32)                         # (16, T)

    # ---- p-layer pair products on the VPU (no MXU replication matmul) ----
    # c[(i*F+j)*E+e] = x[i*E+e] * x[j*E+e]; block_i = tile(x_i, 4) * x.
    parts = [x]
    for i in range(FIELD_SIZE):
        xi = x[i * EMB_SIZE:(i + 1) * EMB_SIZE, :]             # (4, T)
        xi_rep = jnp.concatenate([xi, xi, xi, xi], axis=0)     # (16, T)
        parts.append(xi_rep * x)                               # (16, T)
    xc = jnp.concatenate(parts, axis=0)                        # (80, T) = [x ; c]

    wbig = wbig_ref[...]                                       # (12, 85)
    w1f = wbig[:, :FE + FFE]                                   # (12, 80) = [wz | wc]
    b1f = wbig[:, FE + FFE:FE + FFE + 1]                       # (12, 1)
    w2t = wbig[:, FE + FFE + 1:]                               # (12, 4)  = (BN2∘lin_2).T

    # ---- hidden-1: the single MXU pass (z-path + p-path + lin_1 + BN1) ----
    h1 = jnp.dot(w1f, xc, preferred_element_type=jnp.float32) + b1f
    h1 = jnp.maximum(h1, 0.0)                                  # (12, T)

    wsmall = wsmall_ref[...]                                   # (4, 3): [b2 | w3 | b3]

    # ---- lin_2 + BN2 (folded) + ReLU on VPU/XLU (no MXU pass) ----
    rows = [jnp.sum(w2t[:, m:m + 1] * h1, axis=0, keepdims=True)
            for m in range(H2)]
    h2 = jnp.concatenate(rows, axis=0) + wsmall[:, 0:1]        # (4, T)
    h2 = jnp.maximum(h2, 0.0)

    # ---- lin_3 + sigmoid on VPU/XLU/EUP (no MXU pass) ----
    y = jnp.sum(wsmall[:, 1:2] * h2, axis=0, keepdims=True) + wsmall[0:1, 2:3]
    o_ref[...] = jax.nn.sigmoid(y)                             # (1, T) lane-dense


# ---------------------------------------------------------------------------
# One-time parameter folding (eval-mode BN is a pure affine)
# ---------------------------------------------------------------------------
def _bn_affine(gamma, beta, mean, var):
    s = gamma / jnp.sqrt(var + BN_EPS)
    return s, beta - mean * s


def fold_params(params):
    """Fold BN / weight2z / weight2p / pair-sum into two packed arrays."""
    s1, t1 = _bn_affine(params["bn1_gamma"], params["bn1_beta"],
                        params["bn1_mean"], params["bn1_var"])
    s2, t2 = _bn_affine(params["bn2_gamma"], params["bn2_beta"],
                        params["bn2_mean"], params["bn2_var"])
    w1 = params["w1"]                                 # (12, 20) = [W1a | W1b]
    w1a = s1[:, None] * w1[:, :D1]                    # BN1 folded
    w1b = s1[:, None] * w1[:, D1:]
    b1f = s1 * params["b1"] + t1                      # (12,)

    wz = w1a @ params["w2z"].T                        # (12, 16)
    wcp = w1b @ params["w2p"].T                       # (12, 16) over field pairs
    wc = jnp.repeat(wcp, EMB_SIZE, axis=1)            # (12, 64): col (i*F+j)*E+e
    w2t = (s2[:, None] * params["w2"]).T              # (12, 4)  BN2 folded
    b2f = s2 * params["b2"] + t2                      # (4,)

    wbig = jnp.concatenate([wz, wc, b1f[:, None], w2t], axis=1)     # (12, 85)
    col3 = jnp.concatenate([params["b3"], jnp.zeros((H2 - 1,), jnp.float32)])
    wsmall = jnp.stack([b2f, params["w3"][0, :], col3], axis=1)     # (4, 3)
    return {"emb": params["emb"], "wbig": wbig, "wsmall": wsmall}


# ---------------------------------------------------------------------------
# Forward
# ---------------------------------------------------------------------------
def _tiling(n):
    """Lanes per grid step and padded batch; even grid when >= 2 row-blocks."""
    blocks = -(-n // 128)
    g = max(1, -(-(blocks * 128) // TILE_N_MAX))
    if blocks >= 2:                       # let v7x's 2 TensorCores both work
        g = max(g, 2)
        if g % 2:
            g += 1
    tile = -(-blocks // g) * 128
    return tile, g * tile


def _pnn_forward_impl(x_idx, folded):
    """x_idx: (N, field_size) int32 global indices into the embedding table."""
    n = x_idx.shape[0]
    # Embedding gather + transpose to feature-major (16, N); streamed as bf16.
    # TODO(synk): on v5e verify gather+transpose fuse (no extra HBM round trip).
    x_t = folded["emb"][x_idx].reshape(n, FE).T.astype(jnp.bfloat16)

    tile, n_pad = _tiling(n)
    if n_pad != n:
        x_t = jnp.pad(x_t, ((0, 0), (0, n_pad - n)))
    grid = (n_pad // tile,)

    out = pl.pallas_call(
        _pnn_kernel,
        out_shape=jax.ShapeDtypeStruct((1, n_pad), jnp.float32),
        grid=grid,
        in_specs=[
            pl.BlockSpec((FE, tile), lambda i: (0, i)),        # activations (tiled)
            pl.BlockSpec((H1, WBIG_COLS), lambda i: (0, 0)),   # packed weights (12,85)
            pl.BlockSpec((H2, 3), lambda i: (0, 0)),           # packed tail (4,3)
        ],
        out_specs=pl.BlockSpec((1, tile), lambda i: (0, i)),
        compiler_params=pltpu.CompilerParams(
            dimension_semantics=("parallel",),
            vmem_limit_bytes=32 * 1024 * 1024),
    )(x_t, folded["wbig"], folded["wsmall"])

    return out.reshape(-1)[:n]                    # x.view(num_item)


pnn_forward = jax.jit(_pnn_forward_impl)


# ---------------------------------------------------------------------------
# Pure-JAX reference (mirrors the PyTorch forward, eval mode, unfolded)
# ---------------------------------------------------------------------------
def pnn_reference(x_idx, params):
    n = x_idx.shape[0]
    x = params["emb"][x_idx]                                   # (N, F, E)
    x1 = x.reshape(n, -1) @ params["w2z"]
    p = jnp.einsum("nie,nje->nij", x, x).reshape(n, -1)
    x2 = p @ params["w2p"]
    h = jnp.concatenate([x1, x2], axis=1) @ params["w1"].T + params["b1"]
    h = ((h - params["bn1_mean"]) / jnp.sqrt(params["bn1_var"] + BN_EPS)
         * params["bn1_gamma"] + params["bn1_beta"])
    h = jnp.maximum(h, 0.0)
    h = h @ params["w2"].T + params["b2"]
    h = ((h - params["bn2_mean"]) / jnp.sqrt(params["bn2_var"] + BN_EPS)
         * params["bn2_gamma"] + params["bn2_beta"])
    h = jnp.maximum(h, 0.0)
    h = h @ params["w3"].T + params["b3"]
    return jax.nn.sigmoid(h).reshape(n)


def init_params(key):
    ks = jax.random.split(key, 8)
    n_feat = sum(FEATURE_SIZES)
    return {
        "emb": jax.random.normal(ks[0], (n_feat, EMB_SIZE), jnp.float32) / D1,
        "w2z": jax.random.normal(ks[1], (FE, D1), jnp.float32) / FIELD_SIZE,
        "w2p": jax.random.normal(ks[2], (FIELD_SIZE * FIELD_SIZE, D1), jnp.float32) / FIELD_SIZE,
        "w1": jax.random.normal(ks[3], (H1, 2 * D1), jnp.float32) * 0.1,
        "b1": jax.random.normal(ks[4], (H1,), jnp.float32) * 0.1,
        "w2": jax.random.normal(ks[5], (H2, H1), jnp.float32) * 0.1,
        "b2": jax.random.normal(ks[6], (H2,), jnp.float32) * 0.1,
        "w3": jax.random.normal(ks[7], (1, H2), jnp.float32) * 0.1,
        "b3": jnp.zeros((1,), jnp.float32),
        "bn1_gamma": jnp.ones((H1,), jnp.float32),
        "bn1_beta": jnp.zeros((H1,), jnp.float32),
        "bn1_mean": jnp.zeros((H1,), jnp.float32),
        "bn1_var": jnp.ones((H1,), jnp.float32),
        "bn2_gamma": jnp.ones((H2,), jnp.float32),
        "bn2_beta": jnp.zeros((H2,), jnp.float32),
        "bn2_mean": jnp.zeros((H2,), jnp.float32),
        "bn2_var": jnp.ones((H2,), jnp.float32),
    }


if __name__ == "__main__":
    key = jax.random.PRNGKey(0)
    pkey, xkey1, xkey2 = jax.random.split(key, 3)
    params = init_params(pkey)
    folded = jax.tree_util.tree_map(jax.block_until_ready, fold_params(params))

    # Small smoke test (single tile, padded 8 -> 128 lanes).
    x_small = jax.random.randint(xkey1, (8, FIELD_SIZE), 0, sum(FEATURE_SIZES),
                                 dtype=jnp.int32)
    y_small = jax.block_until_ready(pnn_forward(x_small, folded))
    r_small = pnn_reference(x_small, params)
    assert y_small.shape == (8,)
    assert bool(jnp.all(jnp.isfinite(y_small)))
    assert bool(jnp.allclose(y_small, r_small, atol=2e-3, rtol=0))

    # Multi-tile path (even grid of 2, batch padding, parallel axis).
    x_big = jax.random.randint(xkey2, (2500, FIELD_SIZE), 0, sum(FEATURE_SIZES),
                               dtype=jnp.int32)
    y_big = jax.block_until_ready(pnn_forward(x_big, folded))
    r_big = pnn_reference(x_big, params)
    assert y_big.shape == (2500,)
    assert bool(jnp.all(jnp.isfinite(y_big)))
    assert bool(jnp.allclose(y_big, r_big, atol=2e-3, rtol=0))

    print("KERNEL_OK")
</pallas_src>

<mosaic_0001>
module attributes {stable_mosaic.version = 11 : i64} {
  func.func @_pnn_kernel(%arg0: i32, %arg1: memref<16x128xbf16, #tpu.memory_space<vmem>>, %arg2: memref<12x85xf32, #tpu.memory_space<vmem>>, %arg3: memref<4x3xf32, #tpu.memory_space<vmem>>, %arg4: memref<1x128xf32, #tpu.memory_space<vmem>>) attributes {dimension_semantics = [#tpu.dimension_semantics<parallel>], iteration_bounds = array<i64: 1>, scalar_prefetch = 0 : i64, scratch_operands = 0 : i64, tpu.core_type = #tpu.core_type<tc>, window_params = [{transform_indices = @transform_0, window_bounds = array<i64: 16, 128>}, {pipeline_mode = #tpu.pipeline_mode<synchronous>, transform_indices = @transform_1, window_bounds = array<i64: 12, 85>}, {pipeline_mode = #tpu.pipeline_mode<synchronous>, transform_indices = @transform_2, window_bounds = array<i64: 4, 3>}, {transform_indices = @transform_3, window_bounds = array<i64: 1, 128>}]} {
    %c0 = arith.constant 0 : index
    %c0_0 = arith.constant 0 : index
    %0 = vector.load %arg1[%c0, %c0_0] : memref<16x128xbf16, #tpu.memory_space<vmem>>, vector<16x128xbf16>
    %1 = arith.extf %0 : vector<16x128xbf16> to vector<16x128xf32>
    %2 = vector.extract_strided_slice %1 {offsets = [0, 0], sizes = [4, 128], strides = [1, 1]} : vector<16x128xf32> to vector<4x128xf32>
    %3 = tpu.concatenate %2, %2, %2, %2 in 0 : vector<4x128xf32>, vector<4x128xf32>, vector<4x128xf32>, vector<4x128xf32> -> vector<16x128xf32>
    %4 = arith.mulf %3, %1 : vector<16x128xf32>
    %5 = vector.extract_strided_slice %1 {offsets = [4, 0], sizes = [4, 128], strides = [1, 1]} : vector<16x128xf32> to vector<4x128xf32>
    %6 = tpu.concatenate %5, %5, %5, %5 in 0 : vector<4x128xf32>, vector<4x128xf32>, vector<4x128xf32>, vector<4x128xf32> -> vector<16x128xf32>
    %7 = arith.mulf %6, %1 : vector<16x128xf32>
    %8 = vector.extract_strided_slice %1 {offsets = [8, 0], sizes = [4, 128], strides = [1, 1]} : vector<16x128xf32> to vector<4x128xf32>
    %9 = tpu.concatenate %8, %8, %8, %8 in 0 : vector<4x128xf32>, vector<4x128xf32>, vector<4x128xf32>, vector<4x128xf32> -> vector<16x128xf32>
    %10 = arith.mulf %9, %1 : vector<16x128xf32>
    %11 = vector.extract_strided_slice %1 {offsets = [12, 0], sizes = [4, 128], strides = [1, 1]} : vector<16x128xf32> to vector<4x128xf32>
    %12 = tpu.concatenate %11, %11, %11, %11 in 0 : vector<4x128xf32>, vector<4x128xf32>, vector<4x128xf32>, vector<4x128xf32> -> vector<16x128xf32>
    %13 = arith.mulf %12, %1 : vector<16x128xf32>
    %14 = tpu.concatenate %1, %4, %7, %10, %13 in 0 : vector<16x128xf32>, vector<16x128xf32>, vector<16x128xf32>, vector<16x128xf32>, vector<16x128xf32> -> vector<80x128xf32>
    %c0_1 = arith.constant 0 : index
    %c0_2 = arith.constant 0 : index
    %15 = vector.load %arg2[%c0_1, %c0_2] : memref<12x85xf32, #tpu.memory_space<vmem>>, vector<12x85xf32>
    %16 = vector.extract_strided_slice %15 {offsets = [0, 0], sizes = [12, 80], strides = [1, 1]} : vector<12x85xf32> to vector<12x80xf32>
    %17 = vector.extract_strided_slice %15 {offsets = [0, 80], sizes = [12, 1], strides = [1, 1]} : vector<12x85xf32> to vector<12x1xf32>
    %18 = vector.extract_strided_slice %15 {offsets = [0, 81], sizes = [12, 4], strides = [1, 1]} : vector<12x85xf32> to vector<12x4xf32>
    %cst = arith.constant dense<0.000000e+00> : vector<12x128xf32>
    %19 = tpu.matmul %16, %14, %cst {dimension_numbers = #tpu.dot_dimension_numbers<[1], [0], [0], [1], [0, 0, 1, 1], [], []>} : vector<12x80xf32>, vector<80x128xf32>, vector<12x128xf32> -> vector<12x128xf32>
    %20 = vector.broadcast %17 : vector<12x1xf32> to vector<12x128xf32>
    %21 = arith.addf %19, %20 : vector<12x128xf32>
    %cst_3 = arith.constant 0.000000e+00 : f32
    %22 = vector.broadcast %cst_3 : f32 to vector<12x128xf32>
    %23 = arith.maximumf %21, %22 : vector<12x128xf32>
    %c0_4 = arith.constant 0 : index
    %c0_5 = arith.constant 0 : index
    %24 = vector.load %arg3[%c0_4, %c0_5] : memref<4x3xf32, #tpu.memory_space<vmem>>, vector<4x3xf32>
    %25 = vector.extract_strided_slice %18 {offsets = [0, 0], sizes = [12, 1], strides = [1, 1]} : vector<12x4xf32> to vector<12x1xf32>
    %26 = vector.broadcast %25 : vector<12x1xf32> to vector<12x128xf32>
    %27 = arith.mulf %26, %23 : vector<12x128xf32>
    %cst_6 = arith.constant dense<0.000000e+00> : vector<128xf32>
    %28 = vector.multi_reduction <add>, %27, %cst_6 [0] : vector<12x128xf32> to vector<128xf32>
    %29 = vector.shape_cast %28 : vector<128xf32> to vector<1x128xf32>
    %30 = vector.extract_strided_slice %18 {offsets = [0, 1], sizes = [12, 1], strides = [1, 1]} : vector<12x4xf32> to vector<12x1xf32>
    %31 = vector.broadcast %30 : vector<12x1xf32> to vector<12x128xf32>
    %32 = arith.mulf %31, %23 : vector<12x128xf32>
    %cst_7 = arith.constant dense<0.000000e+00> : vector<128xf32>
    %33 = vector.multi_reduction <add>, %32, %cst_7 [0] : vector<12x128xf32> to vector<128xf32>
    %34 = vector.shape_cast %33 : vector<128xf32> to vector<1x128xf32>
    %35 = vector.extract_strided_slice %18 {offsets = [0, 2], sizes = [12, 1], strides = [1, 1]} : vector<12x4xf32> to vector<12x1xf32>
    %36 = vector.broadcast %35 : vector<12x1xf32> to vector<12x128xf32>
    %37 = arith.mulf %36, %23 : vector<12x128xf32>
    %cst_8 = arith.constant dense<0.000000e+00> : vector<128xf32>
    %38 = vector.multi_reduction <add>, %37, %cst_8 [0] : vector<12x128xf32> to vector<128xf32>
    %39 = vector.shape_cast %38 : vector<128xf32> to vector<1x128xf32>
    %40 = vector.extract_strided_slice %18 {offsets = [0, 3], sizes = [12, 1], strides = [1, 1]} : vector<12x4xf32> to vector<12x1xf32>
    %41 = vector.broadcast %40 : vector<12x1xf32> to vector<12x128xf32>
    %42 = arith.mulf %41, %23 : vector<12x128xf32>
    %cst_9 = arith.constant dense<0.000000e+00> : vector<128xf32>
    %43 = vector.multi_reduction <add>, %42, %cst_9 [0] : vector<12x128xf32> to vector<128xf32>
    %44 = vector.shape_cast %43 : vector<128xf32> to vector<1x128xf32>
    %45 = tpu.concatenate %29, %34, %39, %44 in 0 : vector<1x128xf32>, vector<1x128xf32>, vector<1x128xf32>, vector<1x128xf32> -> vector<4x128xf32>
    %46 = vector.extract_strided_slice %24 {offsets = [0, 0], sizes = [4, 1], strides = [1, 1]} : vector<4x3xf32> to vector<4x1xf32>
    %47 = vector.broadcast %46 : vector<4x1xf32> to vector<4x128xf32>
    %48 = arith.addf %45, %47 : vector<4x128xf32>
    %cst_10 = arith.constant 0.000000e+00 : f32
    %49 = vector.broadcast %cst_10 : f32 to vector<4x128xf32>
    %50 = arith.maximumf %48, %49 : vector<4x128xf32>
    %51 = vector.extract_strided_slice %24 {offsets = [0, 1], sizes = [4, 1], strides = [1, 1]} : vector<4x3xf32> to vector<4x1xf32>
    %52 = vector.broadcast %51 : vector<4x1xf32> to vector<4x128xf32>
    %53 = arith.mulf %52, %50 : vector<4x128xf32>
    %cst_11 = arith.constant dense<0.000000e+00> : vector<128xf32>
    %54 = vector.multi_reduction <add>, %53, %cst_11 [0] : vector<4x128xf32> to vector<128xf32>
    %55 = vector.shape_cast %54 : vector<128xf32> to vector<1x128xf32>
    %56 = vector.extract_strided_slice %24 {offsets = [0, 2], sizes = [1, 1], strides = [1, 1]} : vector<4x3xf32> to vector<1x1xf32>
    %57 = vector.broadcast %56 : vector<1x1xf32> to vector<1x128xf32>
    %58 = arith.addf %55, %57 : vector<1x128xf32>
    %59 = arith.negf %58 : vector<1x128xf32>
    %60 = math.exp %59 : vector<1x128xf32>
    %cst_12 = arith.constant 1.000000e+00 : f32
    %61 = vector.broadcast %cst_12 : f32 to vector<1x128xf32>
    %62 = arith.addf %61, %60 : vector<1x128xf32>
    %63 = arith.divf %61, %62 : vector<1x128xf32>
    %c0_13 = arith.constant 0 : index
    %c0_14 = arith.constant 0 : index
    %64 = vector.load %arg4[%c0_13, %c0_14] : memref<1x128xf32, #tpu.memory_space<vmem>>, vector<1x128xf32>
    tpu.vector_store %arg4[%c0_13, %c0_14], %63 {strides = array<i32>} : memref<1x128xf32, #tpu.memory_space<vmem>>, vector<1x128xf32>,
    return
  }
  func.func @transform_0(%arg0: i32) -> (i32, i32) {
    %c0_i32 = arith.constant 0 : i32
    %c0_i32_0 = arith.constant 0 : i32
    return %c0_i32, %arg0 : i32, i32
  }
  func.func @transform_1(%arg0: i32) -> (i32, i32) {
    %c0_i32 = arith.constant 0 : i32
    %c0_i32_0 = arith.constant 0 : i32
    %c0_i32_1 = arith.constant 0 : i32
    return %c0_i32, %c0_i32_0 : i32, i32
  }
  func.func @transform_2(%arg0: i32) -> (i32, i32) {
    %c0_i32 = arith.constant 0 : i32
    %c0_i32_0 = arith.constant 0 : i32
    %c0_i32_1 = arith.constant 0 : i32
    return %c0_i32, %c0_i32_0 : i32, i32
  }
  func.func @transform_3(%arg0: i32) -> (i32, i32) {
    %c0_i32 = arith.constant 0 : i32
    %c0_i32_0 = arith.constant 0 : i32
    return %c0_i32, %arg0 : i32, i32
  }
}

</mosaic_0001>

<bundles_post_ra>
// kernel: _pnn_forward_impl.1
= control target key start
LH: loop header
LB: loop body
LE: loop exit
PB: predicated region body
PF: predicated region fallthrough
CT: control target
= control target key end

     0   :  { %vm49_vm0 = vcmask 654336   ;;  %v330_v2 = vmov 81   ;;  %vm21_vm1 = vcmask 1043456   ;;  %v331_v8 = vmov 80   ;;  %s384_s0 = inlined_call_operand.vmem [shape: bf16[16,128], index: 0, kind: input, shape index: {}]   ;;  %s385_s1 = inlined_call_operand.vmem [shape: f32[12,85], index: 1, kind: input, shape index: {}]   ;;  %s386_s2 = inlined_call_operand.vmem [shape: f32[4,3], index: 2, kind: input, shape index: {}]   ;;  %s387_s3 = inlined_call_operand.vmem [shape: f32[1,128], index: 3, kind: output, shape index: {}]  }
   0x1   :  { %v249_v0 = vld [vmem:[%s384_s0] sm:$0xff]   ;;  %316 = vset.pattern.permute.xlu1 %v330_v2  ;;  %v38_v5 = vld [vmem:[%s385_s1 + $0x8] sm:$0xf]  ;;  %315 = vset.pattern.permute.xlu0 %v331_v8  ;;  %v332_v16 = vmov 82   ;;  %v333_v25 = vmov 83   ;;  %v334_v27 = vmov 84  }
   0x2   :  { %v37_v1 = vld [vmem:[%s385_s1] sm:$0xff]  ;;  %v250_v3 = vunpack.c.l.bf16 %v249_v0  ;;  %v251_v4 = vunpack.c.h.bf16 %v249_v0  ;;  %288 = vmatprep.subr.bf16.mxu0 %v249_v0  ;;  %137 = vperm.xlu1 %316, %v38_v5   ;;  %v335_v29 = vmov 0   ;;  %v336_v30 = vmov 2  }
   0x3   :  { %284 = vmatprep.mubr.msk.f32.mxu0 %vm49_vm0, %v37_v1  ;;  %290 = vmatpush3.bf16.msra.mxu0 %v249_v0  ;;  %v131_v28 = vld [vmem:[%s386_s2] sm:$0xf]  ;;  %v337_v31 = vmov 1   ;;  %vm204_vm2 = vcmask 1040384   ;;  %vm206_vm3 = vcmask 1041408   ;;  %vm208_vm4 = vcmask 1042432  }
   0x4   :  { %v19_v6 = vrot.slane %v250_v3, 4  ;;  %v29_v7 = vrot.slane %v251_v4, 4  ;;  %46 = vperm.xlu0 %315, %v38_v5  }
   0x6   :  { %v22_v9 = vsel %vm21_vm1, %v250_v3, %v19_v6  ;;  %v25_v10 = vsel %vm21_vm1, %v19_v6, %v250_v3  ;;  %v31_v11 = vsel %vm21_vm1, %v251_v4, %v29_v7  ;;  %317 = vset.pattern.permute.xlu1 %v332_v16  ;;  %v34_v21 = vsel %vm21_vm1, %v29_v7, %v251_v4 }
   0x7   :  { %v23_v12 = vmul.f32 %v250_v3, %v22_v9  ;;  %v24_v13 = vmul.f32 %v251_v4, %v22_v9  ;;  %v26_v14 = vmul.f32 %v250_v3, %v25_v10  ;;  %v27_v15 = vmul.f32 %v251_v4, %v25_v10  ;;  %155 = vperm.xlu1 %317, %v38_v5  }
   0x8   :  { %v32_v19 = vmul.f32 %v250_v3, %v31_v11  ;;  %v33_v20 = vmul.f32 %v251_v4, %v31_v11  ;;  %41 = vperm.xlu0 %315, %v37_v1   ;;  %v35_v23 = vmul.f32 %v250_v3, %v34_v21  ;;  %v36_v24 = vmul.f32 %v251_v4, %v34_v21 }
   0x9   :  { %v291_v17 = vpack.c.bf16 %v24_v13, %v23_v12  ;;  %v295_v18 = vpack.c.bf16 %v27_v15, %v26_v14 }
   0xa   :  { %v299_v22 = vpack.c.bf16 %v33_v20, %v32_v19  ;;  %v303_v26 = vpack.c.bf16 %v36_v24, %v35_v23 }
   0xb   :  { %292 = vmatprep.subr.bf16.mxu0 %v291_v17  ;;  %151 = vperm.xlu1 %317, %v37_v1  }
   0xc   :  { %294 = vmatpush3.bf16.msra.mxu0 %v291_v17  ;;  %318 = vset.pattern.permute.xlu0 %v330_v2 }
   0xd   :  { %296 = vmatprep.subr.bf16.mxu0 %v295_v18  ;;  %133 = vperm.xlu0 %318, %v37_v1  }
   0xf   :  { %319 = vset.pattern.permute.xlu1 %v333_v25 }
  0x10   :  { %298 = vmatpush3.bf16.msra.mxu0 %v295_v18  ;;  %173 = vperm.xlu1 %319, %v38_v5  }
  0x11   :  { %300 = vmatprep.subr.bf16.mxu0 %v299_v22  ;;  %320 = vset.pattern.permute.xlu0 %v333_v25 }
  0x12   :  { %169 = vperm.xlu0 %320, %v37_v1  }
  0x14   :  { %302 = vmatpush3.bf16.msra.mxu0 %v299_v22  ;;  %321 = vset.pattern.permute.xlu1 %v334_v27 }
  0x15   :  { %304 = vmatprep.subr.bf16.mxu0 %v303_v26  ;;  %191 = vperm.xlu1 %321, %v38_v5  }
  0x16   :  { %322 = vset.pattern.permute.xlu0 %v335_v29 }
  0x17   :  { %212 = vperm.xlu0 %322, %v131_v28  }
  0x18   :  { %306 = vmatpush3.bf16.msra.mxu0 %v303_v26 }
  0x19   :  { %187 = vperm.xlu1 %321, %v37_v1  }
  0x1b   :  { %285 = vmatmul.mubr.msk.f32.vlgmr.msra.gmra.mrb[0].mxu0 %vm49_vm0, %v38_v5  ;;  %325 = vset.pattern.permute.xlu0 %v336_v30 }
  0x1d   :  { %323 = vset.pattern.permute.xlu1 %v337_v31 }
  0x1e   :  { %218 = vperm.xlu1 %323, %v131_v28  }
  0x22   :  { %324 = vset.pattern.permute.xlu1 %v336_v30 }
  0x23   :  { %230 = vperm.xlu1 %324, %v131_v28  }
  0x81   :  { %v138_v32 = vpop.permute.xlu1 %137 }
  0x83   :  { %v47_v34 = vpop.permute.xlu0 %46 }
  0x86   :  { %v156_v33 = vpop.permute.xlu1 %155 }
  0x87   :  { %v42_v36 = vpop.permute.xlu0 %41 }
  0x8a   :  { %v152_v35 = vpop.permute.xlu1 %151 }
  0x8c   :  { %v134_v38 = vpop.permute.xlu0 %133 }
  0x8f   :  { %v174_v37 = vpop.permute.xlu1 %173 }
  0x91   :  { %v170_v45 = vpop.permute.xlu0 %169 }
  0x94   :  { %v192_v39 = vpop.permute.xlu1 %191 }
  0x96   :  { %v213_v23 = vpop.permute.xlu0 %212 }
  0x98   :  { %v188_v49 = vpop.permute.xlu1 %187 }
  0x9d   :  { %v219_v29 = vpop.permute.xlu1 %218 }
  0xee   :  { %v286_v40 = vpop.f32.mrb[0].mxu0 }
  0xef   :  { %v126_v41 = vadd.f32 %v286_v40, %v47_v34  ;;  %v120_v42 = vpop.f32.mrb[1].mxu0 }
  0xf0   :  { %v121_v43 = vadd.f32 %v120_v42, %v42_v36 }
  0xf1   :  { %v130_v44 = vmax.f32 %v126_v41, 0.0 }
  0xf2   :  { %v129_v46 = vmax.f32 %v121_v43, 0.0 }
  0xf3   :  { %v141_v47 = vmul.f32 %v138_v32, %v130_v44  ;;  %v159_v48 = vmul.f32 %v156_v33, %v130_v44  ;;  %v195_v50 = vmul.f32 %v192_v39, %v130_v44  ;;  %v177_v51 = vmul.f32 %v174_v37, %v130_v44 }
  0xf4   :  { %v140_v52 = vmul.f32 %v134_v38, %v129_v46  ;;  %v158_v53 = vmul.f32 %v152_v35, %v129_v46  ;;  %v194_v54 = vmul.f32 %v188_v49, %v129_v46  ;;  %v176_v55 = vmul.f32 %v170_v45, %v129_v46  ;;  %v231_v38 = vpop.permute.xlu1 %230 }
  0xf5   :  { %v142_v56 = vsel %vm21_vm1, %v141_v47, 0.0  ;;  %v160_v57 = vsel %vm21_vm1, %v159_v48, 0.0  ;;  %v196_v58 = vsel %vm21_vm1, %v195_v50, 0.0  ;;  %v178_v59 = vsel %vm21_vm1, %v177_v51, 0.0 }
  0xf6   :  { %v143_v60 = vadd.f32 %v142_v56, %v140_v52  ;;  %v161_v61 = vadd.f32 %v160_v57, %v158_v53  ;;  %v197_v62 = vadd.f32 %v196_v58, %v194_v54  ;;  %v179_v63 = vadd.f32 %v178_v59, %v176_v55 }
  0xf8   :  { %v144_v0 = vrot.slane %v143_v60, 4  ;;  %v162_v1 = vrot.slane %v161_v61, 4  ;;  %v198_v2 = vrot.slane %v197_v62, 4  ;;  %v180_v3 = vrot.slane %v179_v63, 4 }
  0xfa   :  { %v145_v4 = vadd.f32 %v144_v0, %v143_v60  ;;  %v163_v5 = vadd.f32 %v162_v1, %v161_v61  ;;  %v199_v6 = vadd.f32 %v198_v2, %v197_v62  ;;  %v181_v7 = vadd.f32 %v180_v3, %v179_v63 }
  0xfc   :  { %v200_v8 = vrot.slane %v199_v6, 2  ;;  %v182_v9 = vrot.slane %v181_v7, 2  ;;  %v146_v10 = vrot.slane %v145_v4, 2  ;;  %v164_v11 = vrot.slane %v163_v5, 2 }
  0xfe   :  { %v201_v12 = vadd.f32 %v200_v8, %v199_v6  ;;  %v183_v13 = vadd.f32 %v182_v9, %v181_v7  ;;  %v147_v14 = vadd.f32 %v146_v10, %v145_v4  ;;  %v165_v15 = vadd.f32 %v164_v11, %v163_v5 }
 0x100   :  { %v184_v16 = vrot.slane %v183_v13, 1  ;;  %v148_v17 = vrot.slane %v147_v14, 1  ;;  %v166_v18 = vrot.slane %v165_v15, 1  ;;  %v202_v19 = vrot.slane %v201_v12, 1 }
 0x102   :  { %v149_v20 = vadd.f32 %v148_v17, %v147_v14  ;;  %v167_v21 = vadd.f32 %v166_v18, %v165_v15  ;;  %v185_v22 = vadd.f32 %v184_v16, %v183_v13  ;;  %v203_v24 = vadd.f32 %v202_v19, %v201_v12 }
 0x104   :  { %v205_v25 = vsel %vm204_vm2, %v149_v20, %v167_v21 }
 0x105   :  { %v207_v26 = vsel %vm206_vm3, %v205_v25, %v185_v22 }
 0x106   :  { %v209_v27 = vsel %vm208_vm4, %v207_v26, %v203_v24 }
 0x107   :  { %v215_v28 = vadd.f32 %v213_v23, %v209_v27 }
 0x109   :  { %v216_v30 = vmax.f32 %v215_v28, 0.0 }
 0x10b   :  { %v221_v31 = vmul.f32 %v219_v29, %v216_v30 }
 0x10d   :  { %v222_v32 = vsel %vm21_vm1, %v221_v31, 0.0 }
 0x10e   :  { %v223_v33 = vrot.slane %v222_v32, 4 }
 0x110   :  { %v224_v34 = vadd.f32 %v223_v33, %v222_v32 }
 0x112   :  { %v225_v35 = vrot.slane %v224_v34, 2 }
 0x114   :  { %v226_v36 = vadd.f32 %v225_v35, %v224_v34 }
 0x116   :  { %v227_v37 = vrot.slane %v226_v36, 1 }
 0x118   :  { %v228_v39 = vadd.f32 %v227_v37, %v226_v36 }
 0x11a   :  { %v233_v40 = vadd.f32 %v231_v38, %v228_v39 }
 0x11c   :  { %v247_v41 = vmul.f32 -1.442695, %v233_v40 }
 0x11e   :  { %326 = vpow2.f32 %v247_v41 }
 0x128   :  { %v327_v42 = vpop.eup %326 }
 0x129   :  { %v237_v43 = vadd.f32 1.0, %v327_v42 }
 0x12b   :  { %328 = vrcp.f32 %v237_v43 }
 0x135   :  { %v329_v44 = vpop.eup %328 }
 0x136   :  { %240 = vst [vmem:[%s387_s3] sm:$0x1] %v329_v44 }

</bundles_post_ra>
